<compile_context>
chip_gen: v7x
topology: tpu7x:2x2x1
jax: 0.10.0
libtpu: 0.0.40
codegen_flags: <defaults>
</compile_context>

<pallas_src>
import numpy as np
import jax
import jax.numpy as jnp
from jax.experimental import pallas as pl
from jax.experimental.pallas import tpu as pltpu


# ----------------------------------------------------------------------------
# Gaussian window helpers (trace-time numpy, matching the PyTorch reference)
# ----------------------------------------------------------------------------

def _gaussian_1d(window_size, sigma):
    xs = np.arange(window_size, dtype=np.float64)
    g = np.exp(-((xs - window_size // 2) ** 2) / (2.0 * sigma ** 2))
    return (g / g.sum()).astype(np.float32)


def _banded_blur_matrix(n, w1):
    """M[i, k] = w1[k - i + half]  =>  (M @ x)[i] = sum_d w1[d] * x[i + d - half],
    with out-of-range taps dropped == F.conv2d zero padding."""
    ws = len(w1)
    half = ws // 2
    m = np.zeros((n, n), np.float32)
    for i in range(n):
        for d in range(ws):
            k = i + d - half
            if 0 <= k < n:
                m[i, k] += w1[d]
    return m


# ----------------------------------------------------------------------------
# Pallas kernel: fused SSIM for a group of P (batch, channel) planes
# ----------------------------------------------------------------------------

def ssim_group_kernel(x1_ref, x2_ref, a_ref, t_ref, out_ref):
    # x1_ref / x2_ref : (P, H, W)   image planes (native dtype)
    # a_ref           : (H, H) bf16 vertical banded Gaussian (zero-pad baked in)
    # t_ref           : (W, W) bf16 horizontal banded Gaussian
    # out_ref         : (P, 1, 1)   per-plane partial sums of the SSIM map
    P, H, W = x1_ref.shape

    x1 = x1_ref[...].astype(jnp.float32)
    x2 = x2_ref[...].astype(jnp.float32)

    # Five blur operands, all planes, stacked along the leading axis:
    #   [x1 | x2 | x1^2 | x2^2 | x1*x2]  ->  (5P, H, W)  (products formed in f32)
    q = jnp.concatenate([x1, x2, x1 * x1, x2 * x2, x1 * x2], axis=0)

    # Horizontal blur: ONE large MXU matmul over all 5P stacked planes.
    qb = q.astype(jnp.bfloat16).reshape(5 * P * H, W)          # free leading merge
    hb = jnp.dot(qb, t_ref[...], preferred_element_type=jnp.float32)   # (5P*H, W) f32

    # Vertical blur: batched matmul (batch = 5P) against the banded A.
    hb3 = hb.reshape(5 * P, H, W).astype(jnp.bfloat16)          # free leading split
    a_b = jnp.broadcast_to(a_ref[...][None], (5 * P, H, H))     # hoisted, once per step
    vb = jnp.einsum('bhk,bkw->bhw', a_b, hb3,
                    preferred_element_type=jnp.float32)         # (5P, H, W) f32

    mu1 = vb[0 * P:1 * P]
    mu2 = vb[1 * P:2 * P]
    e11 = vb[2 * P:3 * P]
    e22 = vb[3 * P:4 * P]
    e12 = vb[4 * P:5 * P]

    mu1_sq = mu1 * mu1
    mu2_sq = mu2 * mu2
    mu1_mu2 = mu1 * mu2
    sigma1_sq = e11 - mu1_sq        # f32 cancellations
    sigma2_sq = e22 - mu2_sq
    sigma12 = e12 - mu1_mu2

    c1 = 0.01 ** 2
    c2 = 0.03 ** 2
    num = (2.0 * mu1_mu2 + c1) * (2.0 * sigma12 + c2)
    den = (mu1_sq + mu2_sq + c1) * (sigma1_sq + sigma2_sq + c2)   # den >= c1*c2 > 0
    ssim_map = num * pl.reciprocal(den, approx=True)              # divide -> EUP slot

    s = jnp.sum(ssim_map, axis=2, keepdims=True)   # lane reduce    -> (P, H, 1)
    s = jnp.sum(s, axis=1, keepdims=True)          # sublane reduce -> (P, 1, 1)
    out_ref[...] = s


# ----------------------------------------------------------------------------
# Wrapper
# ----------------------------------------------------------------------------

def _choose_plane_group(n, per_plane_bytes, budget=24 << 20):
    """Largest group of planes per grid step that fits the VMEM budget while
    keeping >= 2 grid steps when possible (v7x megacore)."""
    p_cap = max(1, int(budget // max(per_plane_bytes, 1)))
    divisors = [d for d in range(1, n + 1) if n % d == 0 and d <= p_cap]
    if not divisors:
        return 1
    multi = [d for d in divisors if n // d >= 2]
    return max(multi) if multi else max(divisors)


def ssim_loss(img1, img2, window_size=11, sigma=1.5, size_average=True):
    assert img1.shape == img2.shape and img1.ndim == 4
    B, C, H, W = img1.shape
    N = B * C

    w1 = _gaussian_1d(window_size, sigma)
    # bf16 operands for the MXU (f32 accumulation happens in-kernel).
    A = jnp.asarray(_banded_blur_matrix(H, w1), dtype=jnp.bfloat16)     # vertical   (H, H)
    T = jnp.asarray(_banded_blur_matrix(W, w1).T, dtype=jnp.bfloat16)   # horizontal (W, W)

    # DMA images in their native dtype; cast inside the kernel.
    x1 = img1.reshape(N, H, W)
    x2 = img2.reshape(N, H, W)
    in_bytes = x1.dtype.itemsize + x2.dtype.itemsize

    # ~30 live f32 (H,W) temporaries per plane + double-buffered input blocks.
    per_plane_bytes = 2 * 2 * H * W * in_bytes + 30 * H * W * 4
    P = _choose_plane_group(N, per_plane_bytes)
    G = N // P

    per_step_bytes = (2 * 2 * P * H * W * in_bytes          # double-buffered x1/x2 blocks
                      + 2 * 2 * (H * H + W * W) * 2         # double-buffered bf16 A/T
                      + 30 * P * H * W * 4                   # live f32 temporaries
                      + (2 << 20))                           # margin
    vmem_limit = int(min(max(per_step_bytes, 32 << 20), 64 << 20))

    cost = pl.CostEstimate(
        flops=int(2 * 5 * N * H * W * (H + W) + 30 * N * H * W),
        transcendentals=int(N * H * W),
        bytes_accessed=int(N * H * W * in_bytes + G * (H * H + W * W) * 2 + N * 4),
    )

    plane_sums = pl.pallas_call(
        ssim_group_kernel,
        out_shape=jax.ShapeDtypeStruct((N, 1, 1), jnp.float32),
        grid=(G,),
        in_specs=[
            pl.BlockSpec((P, H, W), lambda i: (i, 0, 0)),
            pl.BlockSpec((P, H, W), lambda i: (i, 0, 0)),
            pl.BlockSpec((H, H), lambda i: (0, 0)),
            pl.BlockSpec((W, W), lambda i: (0, 0)),
        ],
        out_specs=pl.BlockSpec((P, 1, 1), lambda i: (i, 0, 0)),
        compiler_params=pltpu.CompilerParams(
            dimension_semantics=("parallel",),
            vmem_limit_bytes=vmem_limit),
        cost_estimate=cost,
    )(x1, x2, A, T)

    plane_sums = plane_sums.reshape(B, C)
    if size_average:
        ssim_val = jnp.sum(plane_sums) / (B * C * H * W)
    else:
        ssim_val = jnp.sum(plane_sums, axis=1) / (C * H * W)
    return 1.0 - ssim_val


class SSIMLoss:
    """Mirrors the PyTorch module's interface (the per-channel windows are
    identical, so only window_size / size_average matter)."""

    def __init__(self, window_size=11, channel=3, size_average=True):
        self.window_size = window_size
        self.channel = channel
        self.size_average = size_average

    def __call__(self, img1, img2):
        return ssim_loss(img1, img2, window_size=self.window_size,
                         size_average=self.size_average)


# ----------------------------------------------------------------------------
# Plain-JAX reference (sanity check only)
# ----------------------------------------------------------------------------

def _ssim_loss_reference(img1, img2, window_size=11, sigma=1.5):
    B, C, H, W = img1.shape
    w1 = jnp.asarray(_gaussian_1d(window_size, sigma))
    w2d = jnp.outer(w1, w1)
    window = jnp.broadcast_to(w2d, (C, 1, window_size, window_size))
    pad = window_size // 2

    def blur(x):
        return jax.lax.conv_general_dilated(
            x, window, window_strides=(1, 1),
            padding=((pad, pad), (pad, pad)),
            dimension_numbers=("NCHW", "OIHW", "NCHW"),
            feature_group_count=C)

    mu1 = blur(img1)
    mu2 = blur(img2)
    mu1_sq, mu2_sq, mu1_mu2 = mu1 * mu1, mu2 * mu2, mu1 * mu2
    s1 = blur(img1 * img1) - mu1_sq
    s2 = blur(img2 * img2) - mu2_sq
    s12 = blur(img1 * img2) - mu1_mu2
    c1, c2 = 0.01 ** 2, 0.03 ** 2
    ssim_map = ((2 * mu1_mu2 + c1) * (2 * s12 + c2)) / (
        (mu1_sq + mu2_sq + c1) * (s1 + s2 + c2))
    return 1.0 - jnp.mean(ssim_map)


# ----------------------------------------------------------------------------

if __name__ == "__main__":
    key = jax.random.PRNGKey(0)
    k1, k2 = jax.random.split(key)
    # SSIMLoss default: channel=3, 11x11 window -> small NCHW images.
    img1 = jax.random.uniform(k1, (2, 3, 16, 16), jnp.float32)
    img2 = jax.random.uniform(k2, (2, 3, 16, 16), jnp.float32)

    loss_fn = jax.jit(ssim_loss)
    loss = jax.block_until_ready(loss_fn(img1, img2))

    assert loss.shape == (), loss.shape
    assert bool(jnp.isfinite(loss))

    # Loose sanity check against a plain-JAX depthwise-conv reference
    # (tolerance covers bf16 MXU operands + approx reciprocal).
    ref = _ssim_loss_reference(img1, img2)
    assert abs(float(loss) - float(ref)) < 3e-2, (float(loss), float(ref))

    print("KERNEL_OK")
</pallas_src>

<mosaic_0001>
module attributes {stable_mosaic.version = 11 : i64} {
  func.func @ssim_group_kernel(%arg0: i32, %arg1: memref<3x16x16xf32, #tpu.memory_space<vmem>>, %arg2: memref<3x16x16xf32, #tpu.memory_space<vmem>>, %arg3: memref<16x16xbf16, #tpu.memory_space<vmem>>, %arg4: memref<16x16xbf16, #tpu.memory_space<vmem>>, %arg5: memref<3x1x1xf32, #tpu.memory_space<vmem>>) attributes {dimension_semantics = [#tpu.dimension_semantics<parallel>], iteration_bounds = array<i64: 2>, scalar_prefetch = 0 : i64, scratch_operands = 0 : i64, tpu.core_type = #tpu.core_type<tc>, window_params = [{transform_indices = @transform_0, window_bounds = array<i64: 3, 16, 16>}, {transform_indices = @transform_1, window_bounds = array<i64: 3, 16, 16>}, {pipeline_mode = #tpu.pipeline_mode<synchronous>, transform_indices = @transform_2, window_bounds = array<i64: 16, 16>}, {pipeline_mode = #tpu.pipeline_mode<synchronous>, transform_indices = @transform_3, window_bounds = array<i64: 16, 16>}, {transform_indices = @transform_4, window_bounds = array<i64: 3, 1, 1>}]} {
    %c0 = arith.constant 0 : index
    %c0_0 = arith.constant 0 : index
    %c0_1 = arith.constant 0 : index
    %0 = vector.load %arg1[%c0, %c0_0, %c0_1] : memref<3x16x16xf32, #tpu.memory_space<vmem>>, vector<3x16x16xf32>
    %c0_2 = arith.constant 0 : index
    %c0_3 = arith.constant 0 : index
    %c0_4 = arith.constant 0 : index
    %1 = vector.load %arg2[%c0_2, %c0_3, %c0_4] : memref<3x16x16xf32, #tpu.memory_space<vmem>>, vector<3x16x16xf32>
    %2 = arith.mulf %0, %0 : vector<3x16x16xf32>
    %3 = arith.mulf %1, %1 : vector<3x16x16xf32>
    %4 = arith.mulf %0, %1 : vector<3x16x16xf32>
    %5 = tpu.concatenate %0, %1, %2, %3, %4 in 0 : vector<3x16x16xf32>, vector<3x16x16xf32>, vector<3x16x16xf32>, vector<3x16x16xf32>, vector<3x16x16xf32> -> vector<15x16x16xf32>
    %6 = arith.truncf %5 : vector<15x16x16xf32> to vector<15x16x16xbf16>
    %7 = vector.shape_cast %6 : vector<15x16x16xbf16> to vector<240x16xbf16>
    %c0_5 = arith.constant 0 : index
    %c0_6 = arith.constant 0 : index
    %8 = vector.load %arg4[%c0_5, %c0_6] : memref<16x16xbf16, #tpu.memory_space<vmem>>, vector<16x16xbf16>
    %cst = arith.constant dense<0.000000e+00> : vector<240x16xf32>
    %9 = tpu.matmul %7, %8, %cst {dimension_numbers = #tpu.dot_dimension_numbers<[1], [0], [0], [1], [0, 0, 1, 1], [], []>} : vector<240x16xbf16>, vector<16x16xbf16>, vector<240x16xf32> -> vector<240x16xf32>
    %10 = vector.shape_cast %9 : vector<240x16xf32> to vector<15x16x16xf32>
    %11 = arith.truncf %10 : vector<15x16x16xf32> to vector<15x16x16xbf16>
    %c0_7 = arith.constant 0 : index
    %c0_8 = arith.constant 0 : index
    %12 = vector.load %arg3[%c0_7, %c0_8] : memref<16x16xbf16, #tpu.memory_space<vmem>>, vector<16x16xbf16>
    %13 = vector.shape_cast %12 : vector<16x16xbf16> to vector<1x16x16xbf16>
    %14 = vector.shape_cast %13 : vector<1x16x16xbf16> to vector<1x16x16xbf16>
    %15 = vector.broadcast %14 : vector<1x16x16xbf16> to vector<15x16x16xbf16>
    "tpu.trace_start"() <{level = 10 : i32, message = "bhk,bkw->bhw"}> : () -> ()
    %cst_9 = arith.constant dense<0.000000e+00> : vector<15x16x16xf32>
    %16 = tpu.matmul %15, %11, %cst_9 {dimension_numbers = #tpu.dot_dimension_numbers<[2], [1], [1], [2], [0, 0, 0, 1, 1, 2], [0], [0]>} : vector<15x16x16xbf16>, vector<15x16x16xbf16>, vector<15x16x16xf32> -> vector<15x16x16xf32>
    "tpu.trace_stop"() : () -> ()
    %17 = vector.extract_strided_slice %16 {offsets = [0, 0, 0], sizes = [3, 16, 16], strides = [1, 1, 1]} : vector<15x16x16xf32> to vector<3x16x16xf32>
    %18 = vector.extract_strided_slice %16 {offsets = [3, 0, 0], sizes = [3, 16, 16], strides = [1, 1, 1]} : vector<15x16x16xf32> to vector<3x16x16xf32>
    %19 = vector.extract_strided_slice %16 {offsets = [6, 0, 0], sizes = [3, 16, 16], strides = [1, 1, 1]} : vector<15x16x16xf32> to vector<3x16x16xf32>
    %20 = vector.extract_strided_slice %16 {offsets = [9, 0, 0], sizes = [3, 16, 16], strides = [1, 1, 1]} : vector<15x16x16xf32> to vector<3x16x16xf32>
    %21 = vector.extract_strided_slice %16 {offsets = [12, 0, 0], sizes = [3, 16, 16], strides = [1, 1, 1]} : vector<15x16x16xf32> to vector<3x16x16xf32>
    %22 = arith.mulf %17, %17 : vector<3x16x16xf32>
    %23 = arith.mulf %18, %18 : vector<3x16x16xf32>
    %24 = arith.mulf %17, %18 : vector<3x16x16xf32>
    %25 = arith.subf %19, %22 : vector<3x16x16xf32>
    %26 = arith.subf %20, %23 : vector<3x16x16xf32>
    %27 = arith.subf %21, %24 : vector<3x16x16xf32>
    %cst_10 = arith.constant 2.000000e+00 : f32
    %28 = vector.broadcast %cst_10 : f32 to vector<3x16x16xf32>
    %29 = arith.mulf %28, %24 : vector<3x16x16xf32>
    %cst_11 = arith.constant 9.99999974E-5 : f32
    %30 = vector.broadcast %cst_11 : f32 to vector<3x16x16xf32>
    %31 = arith.addf %29, %30 : vector<3x16x16xf32>
    %cst_12 = arith.constant 2.000000e+00 : f32
    %32 = vector.broadcast %cst_12 : f32 to vector<3x16x16xf32>
    %33 = arith.mulf %32, %27 : vector<3x16x16xf32>
    %cst_13 = arith.constant 8.99999984E-4 : f32
    %34 = vector.broadcast %cst_13 : f32 to vector<3x16x16xf32>
    %35 = arith.addf %33, %34 : vector<3x16x16xf32>
    %36 = arith.mulf %31, %35 : vector<3x16x16xf32>
    %37 = arith.addf %22, %23 : vector<3x16x16xf32>
    %cst_14 = arith.constant 9.99999974E-5 : f32
    %38 = vector.broadcast %cst_14 : f32 to vector<3x16x16xf32>
    %39 = arith.addf %37, %38 : vector<3x16x16xf32>
    %40 = arith.addf %25, %26 : vector<3x16x16xf32>
    %cst_15 = arith.constant 8.99999984E-4 : f32
    %41 = vector.broadcast %cst_15 : f32 to vector<3x16x16xf32>
    %42 = arith.addf %40, %41 : vector<3x16x16xf32>
    %43 = arith.mulf %39, %42 : vector<3x16x16xf32>
    %44 = tpu.reciprocal %43 {approx = true} : vector<3x16x16xf32> -> vector<3x16x16xf32>
    %45 = arith.mulf %36, %44 : vector<3x16x16xf32>
    %cst_16 = arith.constant dense<0.000000e+00> : vector<3x16xf32>
    %46 = vector.multi_reduction <add>, %45, %cst_16 [2] : vector<3x16x16xf32> to vector<3x16xf32>
    %47 = vector.shape_cast %46 : vector<3x16xf32> to vector<3x16x1xf32>
    %cst_17 = arith.constant dense<0.000000e+00> : vector<3x1xf32>
    %48 = vector.multi_reduction <add>, %47, %cst_17 [1] : vector<3x16x1xf32> to vector<3x1xf32>
    %49 = vector.shape_cast %48 : vector<3x1xf32> to vector<3x1x1xf32>
    %c0_18 = arith.constant 0 : index
    %c0_19 = arith.constant 0 : index
    %c0_20 = arith.constant 0 : index
    %50 = vector.load %arg5[%c0_18, %c0_19, %c0_20] : memref<3x1x1xf32, #tpu.memory_space<vmem>>, vector<3x1x1xf32>
    tpu.vector_store %arg5[%c0_18, %c0_19, %c0_20], %49 {strides = array<i32>} : memref<3x1x1xf32, #tpu.memory_space<vmem>>, vector<3x1x1xf32>,
    return
  }
  func.func @transform_0(%arg0: i32) -> (i32, i32, i32) {
    %c0_i32 = arith.constant 0 : i32
    %c0_i32_0 = arith.constant 0 : i32
    %c0_i32_1 = arith.constant 0 : i32
    return %arg0, %c0_i32, %c0_i32_0 : i32, i32, i32
  }
  func.func @transform_1(%arg0: i32) -> (i32, i32, i32) {
    %c0_i32 = arith.constant 0 : i32
    %c0_i32_0 = arith.constant 0 : i32
    %c0_i32_1 = arith.constant 0 : i32
    return %arg0, %c0_i32, %c0_i32_0 : i32, i32, i32
  }
  func.func @transform_2(%arg0: i32) -> (i32, i32) {
    %c0_i32 = arith.constant 0 : i32
    %c0_i32_0 = arith.constant 0 : i32
    %c0_i32_1 = arith.constant 0 : i32
    return %c0_i32, %c0_i32_0 : i32, i32
  }
  func.func @transform_3(%arg0: i32) -> (i32, i32) {
    %c0_i32 = arith.constant 0 : i32
    %c0_i32_0 = arith.constant 0 : i32
    %c0_i32_1 = arith.constant 0 : i32
    return %c0_i32, %c0_i32_0 : i32, i32
  }
  func.func @transform_4(%arg0: i32) -> (i32, i32, i32) {
    %c0_i32 = arith.constant 0 : i32
    %c0_i32_0 = arith.constant 0 : i32
    %c0_i32_1 = arith.constant 0 : i32
    return %arg0, %c0_i32, %c0_i32_0 : i32, i32, i32
  }
}

</mosaic_0001>

<bundles_post_ra>
// kernel: ssim_loss.1
= control target key start
LH: loop header
LB: loop body
LE: loop exit
PB: predicated region body
PF: predicated region fallthrough
CT: control target
= control target key end

     0   :  { %9 = vsyncpa [#allocation3], 0  ;;  %s2169_s0 = inlined_call_operand.hbm [shape: f32[6,16,16], index: 0, kind: input, shape index: {}]   ;;  %s2170_s1 = inlined_call_operand.hbm [shape: f32[6,16,16], index: 1, kind: input, shape index: {}]   ;;  %s2171_s2 = inlined_call_operand.vmem [shape: bf16[16,16], index: 2, kind: input, shape index: {}, may-alias: {2,3}]   ;;  %s2172_s3 = inlined_call_operand.vmem [shape: bf16[16,16], index: 3, kind: input, shape index: {}, may-alias: {2,3}]   ;;  %s2173_s4 = inlined_call_operand.vmem [shape: f32[6,1,1], index: 4, kind: output, shape index: {}]  }
   0x1   :  { %11 = vsyncpa [#allocation3 + $0x1], 0 }
   0x2   :  { %12 = vsyncpa [#allocation5], 0 }
   0x3   :  { %14 = vsyncpa [#allocation5 + $0x1], 0  ;;  %s1832_s15 = smov 0   ;;  %s1834_s16 = smov 0  }
   0x4   :  { %s1836_s17 = smov 0   ;;  %s1838_s18 = smov 0  }
   0x5 LB: > { %s1389_s19 = sadd.s32 4294967295, %s1799_s18   ;;  %s1852_s20 = sadd.s32 1, %s1799_s18   ;;  %s1799_s18 = sphi %s1838_s18, %s2183_s18   ;;  %s1795_s17 = sphi %s1836_s17, %s2182_s17   ;;  %s1791_s16 = sphi %s1834_s16, %s2181_s16   ;;  %s1787_s15 = sphi %s1832_s15, %s2180_s15  }
   0x6   : > { %s24_s21 = ssub.s32 %s1799_s18, %s1852_s20  ;;  %s27_s22 = sadd.s32 1, %s1795_s17 }
   0x7   : > { %p25_p0 = scmp.eq.s32.totalorder %s24_s21, 0  ;;  %p34_p1 = scmp.ne.s32.totalorder %s1795_s17, %s1791_s16 }
   0x8   : > { %p35_p2 = scmp.eq.s32.totalorder %s1799_s18, 0  ;;  %p40_p3 = scmp.ne.s32.totalorder %s1791_s16, %s1787_s15 }
   0x9   : > { %s1862_s23 = scalar_select %p25_p0, %s1795_s17, %s27_s22  }
   0xa   : > { %p36_p4 = por %p35_p2, %p34_p1  ;;  %p41_p5 = scmp.eq.s32.totalorder %s1389_s19, 0 }
   0xb   : > { %p1650_p6 = scmp.lt.s32.totalorder %s1799_s18, 2  ;;  %s1872_s25 = sand.u32 1, %s1795_s17  }
   0xc   : > { %p1867_p7 = por %p41_p5, %p40_p3  ;;  %s1636_s26 = smul.u32 48, %s1872_s25 }
   0xd   : > { %s1436_s27 = smul.u32 768, %s1799_s18  ;;  %p1876_p8 = pnand %p1650_p6, %p36_p4 }
   0xe   : > { %s2175_s24 = scalar_select %p1867_p7, 1, 0 }
   0xf   : > { %s1885_s5 = scalar_lea.hbm %s2169_s0, %s1436_s27  ;;  %s168_s6 = scalar_lea.vmem [#allocation2], %s1636_s26 }
  0x10   : > { %s176_s7 = sshll.u32 %s168_s6, 4  ;;  %s165_s8 = scalar_lea.sflag [#allocation3], %s1872_s25  ;;  %s1889_s7 = int_to_ptr.vmem [resolvable:$true] %s176_s7 }
  0x11   : > { %s1701_s9 = scalar_lea.hbm %s1885_s5, 768  ;;  %p1703_p11 = pneg %p1876_p8 }
  0x12   : > { %p1702_p10 = scmp.ne.s32.totalorder %s1885_s5, %s1701_s9  ;;  %s1706_s12 = scalar_lea.hbm %s2169_s0, 1536 }
  0x13   : > { %p1707_p0 = scmp.lt.u32.totalorder %s1885_s5, %s2169_s0  ;;  %p1708_p1 = scmp.lt.u32.totalorder %s1706_s12, %s1701_s9 }
  0x14   : > { %p1704_p12 = pnand %p1703_p11, %p1702_p10  ;;  %p1710_p3 = scmp.lt.u32.totalorder %s1701_s9, %s1885_s5 }
  0x15   : > { %p1709_p2 = por %p1708_p1, %p1707_p0 }
  0x16   : > { %p1705_p13 = pneg %p1704_p12 }
  0x17   : > { %p1711_p4 = por %p1710_p3, %p1709_p2 }
  0x19   : > { %p1712_p5 = pnand %p1711_p4, %p1705_p13 }
  0x1b   : > { %1715 = shalt.err (!%p1712_p5)
}
  0x1c   : > { %s1716_s15 = scalar_lea.vmem %s1889_s7, 768  ;;  %s1801_s21 = smov [#allocation2]  }
  0x1d   : > { %p1717_p6 = scmp.ne.s32.totalorder %s1889_s7, %s1716_s15  ;;  %s1721_s22 = sshll.u32 %s1801_s21, 4  ;;  %s1722_s22 = int_to_ptr.vmem [resolvable:$false] %s1721_s22 }
  0x1e   : > { %s1723_s29 = scalar_lea.vmem %s1722_s22, 1536  ;;  %p1724_p9 = scmp.lt.s32.totalorder %s1889_s7, %s1722_s22 }
  0x1f   : > { %p1719_p10 = pnand %p1717_p6, %p1703_p11  ;;  %p1725_p0 = scmp.lt.s32.totalorder %s1723_s29, %s1716_s15 }
  0x21   : > { %p1720_p12 = pneg %p1719_p10  ;;  %p1726_p1 = por %p1725_p0, %p1724_p9 }
  0x23   : > { %p1727_p2 = pnand %p1726_p1, %p1720_p12 }
  0x25   : > { %1730 = shalt.err (!%p1727_p2)
}
  0x26   : > { %s1802_s30 = smov 128   ;;  %s1803_s6 = smov 8  }
  0x27   : > { %1646 = dma.hbm_to_vmem [thread:$0]  (!%p1876_p8), %s1885_s5, 768, %s1889_s7, %s165_s8, %s1802_s30, %s1802_s30, %s1803_s6  }
  0x28   : > { %p206_p9 = scmp.lt.s32.totalorder %s1799_s18, 3  ;;  %s1929_s11 = scalar_lea.hbm %s2170_s1, %s1436_s27 }
  0x29   : > { %p2177_p13 = scmp.ge.s32.totalorder %s1799_s18, 1  ;;  %s190_s13 = scalar_lea.vmem [#allocation4], %s1636_s26 }
  0x2a   : > { %s198_s14 = sshll.u32 %s190_s13, 4  ;;  %s187_s5 = scalar_lea.sflag [#allocation5], %s1872_s25  ;;  %s1939_s14 = int_to_ptr.vmem [resolvable:$true] %s198_s14 }
  0x2b   : > { %p1933_p3 = pnand %p2177_p13, %p206_p9  ;;  %s1731_s7 = scalar_lea.hbm %s1929_s11, 768 }
  0x2c   : > { %p1732_p4 = scmp.ne.s32.totalorder %s1929_s11, %s1731_s7  ;;  %s1736_s15 = scalar_lea.hbm %s2170_s1, 1536 }
  0x2d   : > { %p1737_p10 = scmp.lt.u32.totalorder %s1929_s11, %s2170_s1  ;;  %p1738_p12 = scmp.lt.u32.totalorder %s1736_s15, %s1731_s7 }
  0x2e   : > { %p1734_p5 = pnand %p1732_p4, %p1703_p11  ;;  %p1740_p1 = scmp.lt.u32.totalorder %s1731_s7, %s1929_s11 }
  0x2f   : > { %p1739_p0 = por %p1738_p12, %p1737_p10 }
  0x30   : > { %p1735_p6 = pneg %p1734_p5 }
  0x31   : > { %p1741_p2 = por %p1740_p1, %p1739_p0 }
  0x33   : > { %p1742_p9 = pnand %p1741_p2, %p1735_p6 }
  0x35   : > { %1745 = shalt.err (!%p1742_p9)
}
  0x36   : > { %s1746_s26 = scalar_lea.vmem %s1939_s14, 768  ;;  %s1804_s29 = smov [#allocation4]  }
  0x37   : > { %p1747_p13 = scmp.ne.s32.totalorder %s1939_s14, %s1746_s26  ;;  %s1751_s9 = sshll.u32 %s1804_s29, 4  ;;  %s1752_s9 = int_to_ptr.vmem [resolvable:$false] %s1751_s9 }
  0x38   : > { %s1753_s10 = scalar_lea.vmem %s1752_s9, 1536  ;;  %p1754_p7 = scmp.lt.s32.totalorder %s1939_s14, %s1752_s9 }
  0x39   : > { %p1749_p4 = pnand %p1747_p13, %p1703_p11  ;;  %p1755_p10 = scmp.lt.s32.totalorder %s1753_s10, %s1746_s26 }
  0x3b   : > { %p1750_p5 = pneg %p1749_p4  ;;  %p1756_p12 = por %p1755_p10, %p1754_p7 }
  0x3d   : > { %p1757_p0 = pnand %p1756_p12, %p1750_p5 }
  0x3f   : > { %1760 = shalt.err (!%p1757_p0)
}
  0x40   : > { %1649 = dma.hbm_to_vmem [thread:$0]  (!%p1876_p8), %s1929_s11, 768, %s1939_s14, %s187_s5, %s1802_s30, %s1802_s30, %s1803_s6  }
  0x41   : > { %210 = sbr.rel (%p1933_p3) target bundleno = 794 (0x31a), region = 36  ;;  %s212_s13 = sand.u32 (!%p1933_p3), 1, %s1791_s16  }
  0x42   : > { %s1638_s7 = smul.u32 (!%p1933_p3), 48, %s212_s13  ;;  %s213_s27 = scalar_lea.sflag (!%p1933_p3), [#allocation3], %s212_s13 }
  0x43   : > { %p2179_p7 = scmp.ne.s32.totalorder (!%p1933_p3), %s2175_s24, 0 }
  0x44   : > { %s1973_s8 = scalar_lea.vmem (!%p1933_p3), [#allocation2], %s1638_s7 }
  0x48   : > { %1778 = dma.done.wait (%p2179_p7), %s213_s27, 768  }
  0x49   : > { %1780 = vsyncadd (%p2179_p7), %s213_s27, 4294966528  ;;  %s222_s25 = scalar_lea.sflag [#allocation5], %s212_s13  ;;  %s225_s28 = scalar_lea.vmem [#allocation4], %s1638_s7 }
  0x4a   : > { %1782 = dma.done.wait (%p2179_p7), %s222_s25, 768  }
  0x4b   : > { %1784 = vsyncadd (%p2179_p7), %s222_s25, 4294966528  ;;  %v1805_v0 = vmov 0.0   ;;  %vm1806_vm0 = vmmov 0   ;;  %v1687_v1 = vld [vmem:[%s2172_s3] sm:$0xff]   ;;  %v263_v3 = vld [vmem:[%s1973_s8 + $0x8] sm:$0xff]  ;;  %vm315_vm1 = vcmask 130048  }
  0x4c   : > { %1484 = vmatprep.subr.bf16.mxu0 %v1805_v0  ;;  %1486 = vmatprep.mubr.msk.bf16.mxu0 %vm1806_vm0, %v1805_v0  ;;  %v262_v2 = vld [vmem:[%s1973_s8] sm:$0xff]  ;;  %v264_v5 = vld [vmem:[%s1973_s8 + $0x10] sm:$0xff]  ;;  %v265_v6 = vld [vmem:[%s1973_s8 + $0x18] sm:$0xff]  ;;  %v275_v30 = vmul.f32 %v263_v3, %v263_v3  ;;  %s256_s12 = smul.u32 3, %s1389_s19  ;;  %vm1301_vm2 = vcmask 0  }
  0x4d   : > { %1546 = vmatprep.subr.bf16.mxu1 %v1805_v0  ;;  %1548 = vmatprep.mubr.msk.bf16.mxu1 %vm1806_vm0, %v1805_v0  ;;  %v292_v4 = vpack.c.bf16 %v263_v3, %v262_v2  ;;  %v266_v7 = vld [vmem:[%s1973_s8 + $0x20] sm:$0xff]  ;;  %v269_v9 = vld [vmem:[%s225_s28 + $0x8] sm:$0xff]  ;;  %v270_v10 = vld [vmem:[%s225_s28 + $0x10] sm:$0xff]  ;;  %v293_v20 = vpack.c.bf16 %v265_v6, %v264_v5  ;;  %v274_v29 = vmul.f32 %v262_v2, %v262_v2 }
  0x4e   : > { %1485 = vmatpush3.bf16.msra.mxu0 %v1687_v1  ;;  %v268_v8 = vld [vmem:[%s225_s28] sm:$0xff]  ;;  %v271_v11 = vld [vmem:[%s225_s28 + $0x18] sm:$0xff]  ;;  %v287_v14 = vmul.f32 %v269_v9, %v263_v3  ;;  %v267_v15 = vld [vmem:[%s1973_s8 + $0x28] sm:$0xff]  ;;  %v288_v17 = vmul.f32 %v270_v10, %v264_v5  ;;  %v276_v32 = vmul.f32 %v264_v5, %v264_v5  ;;  %v277_v33 = vmul.f32 %v265_v6, %v265_v6  ;;  %p257_p8 = scmp.lt.s32.totalorder %s256_s12, 5 }
  0x4f   : > { %v272_v12 = vld [vmem:[%s225_s28 + $0x20] sm:$0xff]  ;;  %v286_v13 = vmul.f32 %v268_v8, %v262_v2  ;;  %v273_v16 = vld [vmem:[%s225_s28 + $0x28] sm:$0xff]  ;;  %v289_v18 = vmul.f32 %v271_v11, %v265_v6  ;;  %v294_v25 = vpack.c.bf16 %v267_v15, %v266_v7  ;;  %v295_v26 = vpack.c.bf16 %v269_v9, %v268_v8 }
  0x50   : > { %v290_v19 = vmul.f32 %v272_v12, %v266_v7  ;;  %v291_v22 = vmul.f32 %v273_v16, %v267_v15  ;;  %v296_v27 = vpack.c.bf16 %v271_v11, %v270_v10  ;;  %v297_v28 = vpack.c.bf16 %v273_v16, %v272_v12  ;;  %v2044_v52 = vld [vmem:[%s2171_s2] sm:$0xff]   ;;  %s2185_s12 = smov (!%p257_p8, %s256_s12), 5 }
  0x51   : > { %1487 = vmatmul.mubr.msk.bf16.vlgmr.msra.gmra.mrb[0].mxu0 %vm315_vm1, %v292_v4  ;;  %v304_v21 = vpack.c.bf16 %v287_v14, %v286_v13  ;;  %v305_v23 = vpack.c.bf16 %v289_v18, %v288_v17  ;;  %v298_v31 = vpack.c.bf16 %v275_v30, %v274_v29  ;;  %v299_v34 = vpack.c.bf16 %v277_v33, %v276_v32  ;;  %s259_s15 = scalar_lea.vmem %s2173_s4, %s2185_s12 }
  0x52   : > { %1490 = vmatprep.mubr.msk.bf16.mxu0 %vm1806_vm0, %v1805_v0  ;;  %v306_v24 = vpack.c.bf16 %v291_v22, %v290_v19  ;;  %v278_v35 = vmul.f32 %v266_v7, %v266_v7  ;;  %v279_v36 = vmul.f32 %v267_v15, %v267_v15  ;;  %v280_v38 = vmul.f32 %v268_v8, %v268_v8 }
  0x53   : > { %v281_v39 = vmul.f32 %v269_v9, %v269_v9  ;;  %v282_v41 = vmul.f32 %v270_v10, %v270_v10  ;;  %v283_v42 = vmul.f32 %v271_v11, %v271_v11  ;;  %v284_v44 = vmul.f32 %v272_v12, %v272_v12 }
  0x54   : > { %v300_v37 = vpack.c.bf16 %v279_v36, %v278_v35  ;;  %v285_v45 = vmul.f32 %v273_v16, %v273_v16 }
  0x55   : > { %v301_v40 = vpack.c.bf16 %v281_v39, %v280_v38  ;;  %v302_v43 = vpack.c.bf16 %v283_v42, %v282_v41 }
  0x56   : > { %v303_v46 = vpack.c.bf16 %v285_v45, %v284_v44 }
  0x59   : > { %1491 = vmatmul.mubr.msk.bf16.gmra.mrb[4].mxu0 %vm315_vm1, %v293_v20 }
  0x5a   : > { %1494 = vmatprep.mubr.msk.bf16.mxu0 %vm1806_vm0, %v1805_v0 }
  0x61   : > { %1495 = vmatmul.mubr.msk.bf16.gmra.mrb[8].mxu0 %vm315_vm1, %v294_v25 }
  0x62   : > { %1498 = vmatprep.mubr.msk.bf16.mxu0 %vm1806_vm0, %v1805_v0 }
  0x69   : > { %1499 = vmatmul.mubr.msk.bf16.gmra.mrb[12].mxu0 %vm315_vm1, %v295_v26 }
  0x6a   : > { %1502 = vmatprep.mubr.msk.bf16.mxu0 %vm1806_vm0, %v1805_v0 }
  0x71   : > { %1503 = vmatmul.mubr.msk.bf16.gmra.mrb[16].mxu0 %vm315_vm1, %v296_v27 }
  0x72   : > { %1506 = vmatprep.mubr.msk.bf16.mxu0 %vm1806_vm0, %v1805_v0 }
  0x79   : > { %1507 = vmatmul.mubr.msk.bf16.gmra.mrb[20].mxu0 %vm315_vm1, %v297_v28 }
  0x7a   : > { %1510 = vmatprep.mubr.msk.bf16.mxu0 %vm1806_vm0, %v1805_v0 }
  0x81   : > { %1511 = vmatmul.mubr.msk.bf16.gmra.mrb[24].mxu0 %vm315_vm1, %v298_v31 }
  0x82   : > { %1514 = vmatprep.mubr.msk.bf16.mxu0 %vm1806_vm0, %v1805_v0 }
  0x89   : > { %1515 = vmatmul.mubr.msk.bf16.gmra.mrb[28].mxu0 %vm315_vm1, %v299_v34 }
  0x8a   : > { %1518 = vmatprep.mubr.msk.bf16.mxu0 %vm1806_vm0, %v1805_v0 }
  0x91   : > { %1519 = vmatmul.mubr.msk.bf16.gmra.mrb[32].mxu0 %vm315_vm1, %v300_v37 }
  0x92   : > { %1522 = vmatprep.mubr.msk.bf16.mxu0 %vm1806_vm0, %v1805_v0 }
  0x99   : > { %1523 = vmatmul.mubr.msk.bf16.gmra.mrb[36].mxu0 %vm315_vm1, %v301_v40 }
  0x9a   : > { %1526 = vmatprep.mubr.msk.bf16.mxu0 %vm1806_vm0, %v1805_v0 }
  0xa1   : > { %1527 = vmatmul.mubr.msk.bf16.gmra.mrb[40].mxu0 %vm315_vm1, %v302_v43 }
  0xa2   : > { %1530 = vmatprep.mubr.msk.bf16.mxu0 %vm1806_vm0, %v1805_v0 }
  0xa9   : > { %1531 = vmatmul.mubr.msk.bf16.gmra.mrb[44].mxu0 %vm315_vm1, %v303_v46 }
  0xaa   : > { %1534 = vmatprep.mubr.msk.bf16.mxu0 %vm1806_vm0, %v1805_v0 }
  0xb1   : > { %1535 = vmatmul.mubr.msk.bf16.gmra.mrb[48].mxu0 %vm315_vm1, %v304_v21 }
  0xb2   : > { %1538 = vmatprep.mubr.msk.bf16.mxu0 %vm1806_vm0, %v1805_v0 }
  0xb9   : > { %1539 = vmatmul.mubr.msk.bf16.gmra.mrb[52].mxu0 %vm315_vm1, %v305_v23 }
  0xba   : > { %1542 = vmatprep.mubr.msk.bf16.mxu0 %vm1806_vm0, %v1805_v0 }
  0xc1   : > { %1543 = vmatmul.mubr.msk.bf16.gmra.mrb[56].mxu0 %vm315_vm1, %v306_v24 }
 0x124   : > { %v395_v47 = vpop.f32.mrb[0].mxu0 }
 0x125   : > { %v1488_v48 = vpop.f32.mrb[1].mxu0 }
 0x126   : > { %v398_v49 = vpop.f32.mrb[2].mxu0 }
 0x127   : > { %v514_v50 = vpack.c.bf16 %v398_v49, %v395_v47  ;;  %v1489_v51 = vpop.f32.mrb[3].mxu0 }
 0x129   : > { %1547 = vmatpush3.bf16.msra.mxu1 %v514_v50 }
 0x12a   : > { %1552 = vmatprep.subr.bf16.mxu1 %v1805_v0 }
 0x12c   : > { %v403_v53 = vpop.f32.mrb[4].mxu0  ;;  %1549 = vmatmul.mubr.msk.bf16.vlgmr.msra.gmra.mrb[0].mxu1 %vm315_vm1, %v2044_v52 }
 0x12d   : > { %v1492_v54 = vpop.f32.mrb[5].mxu0  ;;  %1554 = vmatprep.mubr.msk.bf16.mxu1 %vm1806_vm0, %v1805_v0 }
 0x12e   : > { %v406_v55 = vpop.f32.mrb[6].mxu0 }
 0x12f   : > { %v515_v56 = vpack.c.bf16 %v406_v55, %v403_v53  ;;  %v1493_v57 = vpop.f32.mrb[7].mxu0 }
 0x131   : > { %1553 = vmatpush3.bf16.msra.mxu1 %v515_v56 }
 0x132   : > { %1558 = vmatprep.subr.bf16.mxu1 %v1805_v0 }
 0x134   : > { %v411_v58 = vpop.f32.mrb[8].mxu0  ;;  %1555 = vmatmul.mubr.msk.bf16.vlgmr.msra.gmra.mrb[4].mxu1 %vm315_vm1, %v2044_v52 }
 0x135   : > { %v1496_v59 = vpop.f32.mrb[9].mxu0  ;;  %1560 = vmatprep.mubr.msk.bf16.mxu1 %vm1806_vm0, %v1805_v0 }
 0x136   : > { %v414_v60 = vpop.f32.mrb[10].mxu0 }
 0x137   : > { %v516_v61 = vpack.c.bf16 %v414_v60, %v411_v58  ;;  %v1497_v62 = vpop.f32.mrb[11].mxu0 }
 0x139   : > { %1559 = vmatpush3.bf16.msra.mxu1 %v516_v61 }
 0x13a   : > { %1564 = vmatprep.subr.bf16.mxu1 %v1805_v0 }
 0x13c   : > { %v419_v63 = vpop.f32.mrb[12].mxu0  ;;  %1561 = vmatmul.mubr.msk.bf16.vlgmr.msra.gmra.mrb[8].mxu1 %vm315_vm1, %v2044_v52 }
 0x13d   : > { %v1500_v1 = vpop.f32.mrb[13].mxu0  ;;  %1566 = vmatprep.mubr.msk.bf16.mxu1 %vm1806_vm0, %v1805_v0 }
 0x13e   : > { %v422_v2 = vpop.f32.mrb[14].mxu0 }
 0x13f   : > { %v517_v3 = vpack.c.bf16 %v422_v2, %v419_v63  ;;  %v1501_v4 = vpop.f32.mrb[15].mxu0 }
 0x141   : > { %1565 = vmatpush3.bf16.msra.mxu1 %v517_v3 }
 0x142   : > { %1570 = vmatprep.subr.bf16.mxu1 %v1805_v0 }
 0x144   : > { %v427_v5 = vpop.f32.mrb[16].mxu0  ;;  %1567 = vmatmul.mubr.msk.bf16.vlgmr.msra.gmra.mrb[12].mxu1 %vm315_vm1, %v2044_v52 }
 0x145   : > { %v1504_v6 = vpop.f32.mrb[17].mxu0  ;;  %1572 = vmatprep.mubr.msk.bf16.mxu1 %vm1806_vm0, %v1805_v0 }
 0x146   : > { %v430_v7 = vpop.f32.mrb[18].mxu0 }
 0x147   : > { %v518_v8 = vpack.c.bf16 %v430_v7, %v427_v5  ;;  %v1505_v9 = vpop.f32.mrb[19].mxu0 }
 0x149   : > { %1571 = vmatpush3.bf16.msra.mxu1 %v518_v8 }
 0x14a   : > { %1576 = vmatprep.subr.bf16.mxu1 %v1805_v0 }
 0x14c   : > { %v435_v10 = vpop.f32.mrb[20].mxu0  ;;  %1573 = vmatmul.mubr.msk.bf16.vlgmr.msra.gmra.mrb[16].mxu1 %vm315_vm1, %v2044_v52 }
 0x14d   : > { %v1508_v11 = vpop.f32.mrb[21].mxu0  ;;  %1578 = vmatprep.mubr.msk.bf16.mxu1 %vm1806_vm0, %v1805_v0 }
 0x14e   : > { %v438_v12 = vpop.f32.mrb[22].mxu0 }
 0x14f   : > { %v519_v13 = vpack.c.bf16 %v438_v12, %v435_v10  ;;  %v1509_v14 = vpop.f32.mrb[23].mxu0 }
 0x151   : > { %1577 = vmatpush3.bf16.msra.mxu1 %v519_v13 }
 0x152   : > { %1582 = vmatprep.subr.bf16.mxu1 %v1805_v0 }
 0x154   : > { %v443_v15 = vpop.f32.mrb[24].mxu0  ;;  %1579 = vmatmul.mubr.msk.bf16.vlgmr.msra.gmra.mrb[20].mxu1 %vm315_vm1, %v2044_v52 }
 0x155   : > { %v1512_v16 = vpop.f32.mrb[25].mxu0  ;;  %1584 = vmatprep.mubr.msk.bf16.mxu1 %vm1806_vm0, %v1805_v0 }
 0x156   : > { %v446_v17 = vpop.f32.mrb[26].mxu0 }
 0x157   : > { %v520_v18 = vpack.c.bf16 %v446_v17, %v443_v15  ;;  %v1513_v19 = vpop.f32.mrb[27].mxu0 }
 0x159   : > { %1583 = vmatpush3.bf16.msra.mxu1 %v520_v18 }
 0x15a   : > { %1588 = vmatprep.subr.bf16.mxu1 %v1805_v0 }
 0x15c   : > { %v451_v20 = vpop.f32.mrb[28].mxu0  ;;  %1585 = vmatmul.mubr.msk.bf16.vlgmr.msra.gmra.mrb[24].mxu1 %vm315_vm1, %v2044_v52 }
 0x15d   : > { %v1516_v21 = vpop.f32.mrb[29].mxu0  ;;  %1590 = vmatprep.mubr.msk.bf16.mxu1 %vm1806_vm0, %v1805_v0 }
 0x15e   : > { %v454_v22 = vpop.f32.mrb[30].mxu0 }
 0x15f   : > { %v521_v23 = vpack.c.bf16 %v454_v22, %v451_v20  ;;  %v1517_v24 = vpop.f32.mrb[31].mxu0 }
 0x161   : > { %1589 = vmatpush3.bf16.msra.mxu1 %v521_v23 }
 0x162   : > { %1594 = vmatprep.subr.bf16.mxu1 %v1805_v0 }
 0x164   : > { %v459_v25 = vpop.f32.mrb[32].mxu0  ;;  %1591 = vmatmul.mubr.msk.bf16.vlgmr.msra.gmra.mrb[28].mxu1 %vm315_vm1, %v2044_v52 }
 0x165   : > { %v1520_v26 = vpop.f32.mrb[33].mxu0  ;;  %1596 = vmatprep.mubr.msk.bf16.mxu1 %vm1806_vm0, %v1805_v0 }
 0x166   : > { %v462_v27 = vpop.f32.mrb[34].mxu0 }
 0x167   : > { %v522_v28 = vpack.c.bf16 %v462_v27, %v459_v25  ;;  %v1521_v29 = vpop.f32.mrb[35].mxu0 }
 0x169   : > { %1595 = vmatpush3.bf16.msra.mxu1 %v522_v28 }
 0x16a   : > { %1600 = vmatprep.subr.bf16.mxu1 %v1805_v0 }
 0x16c   : > { %v467_v30 = vpop.f32.mrb[36].mxu0  ;;  %1597 = vmatmul.mubr.msk.bf16.vlgmr.msra.gmra.mrb[32].mxu1 %vm315_vm1, %v2044_v52 }
 0x16d   : > { %v1524_v31 = vpop.f32.mrb[37].mxu0  ;;  %1602 = vmatprep.mubr.msk.bf16.mxu1 %vm1806_vm0, %v1805_v0 }
 0x16e   : > { %v470_v32 = vpop.f32.mrb[38].mxu0 }
 0x16f   : > { %v523_v33 = vpack.c.bf16 %v470_v32, %v467_v30  ;;  %v1525_v34 = vpop.f32.mrb[39].mxu0 }
 0x171   : > { %1601 = vmatpush3.bf16.msra.mxu1 %v523_v33 }
 0x172   : > { %1606 = vmatprep.subr.bf16.mxu1 %v1805_v0 }
 0x174   : > { %v475_v35 = vpop.f32.mrb[40].mxu0  ;;  %1603 = vmatmul.mubr.msk.bf16.vlgmr.msra.gmra.mrb[36].mxu1 %vm315_vm1, %v2044_v52 }
 0x175   : > { %v1528_v36 = vpop.f32.mrb[41].mxu0  ;;  %1608 = vmatprep.mubr.msk.bf16.mxu1 %vm1806_vm0, %v1805_v0 }
 0x176   : > { %v478_v37 = vpop.f32.mrb[42].mxu0 }
 0x177   : > { %v524_v38 = vpack.c.bf16 %v478_v37, %v475_v35  ;;  %v1529_v39 = vpop.f32.mrb[43].mxu0 }
 0x179   : > { %1607 = vmatpush3.bf16.msra.mxu1 %v524_v38 }
 0x17a   : > { %1612 = vmatprep.subr.bf16.mxu1 %v1805_v0 }
 0x17c   : > { %v483_v40 = vpop.f32.mrb[44].mxu0  ;;  %1609 = vmatmul.mubr.msk.bf16.vlgmr.msra.gmra.mrb[40].mxu1 %vm315_vm1, %v2044_v52 }
 0x17d   : > { %v1532_v41 = vpop.f32.mrb[45].mxu0  ;;  %1614 = vmatprep.mubr.msk.bf16.mxu1 %vm1806_vm0, %v1805_v0 }
 0x17e   : > { %v486_v42 = vpop.f32.mrb[46].mxu0 }
 0x17f   : > { %v525_v43 = vpack.c.bf16 %v486_v42, %v483_v40  ;;  %v1533_v44 = vpop.f32.mrb[47].mxu0 }
 0x181   : > { %1613 = vmatpush3.bf16.msra.mxu1 %v525_v43 }
 0x182   : > { %1618 = vmatprep.subr.bf16.mxu1 %v1805_v0 }
 0x184   : > { %v491_v45 = vpop.f32.mrb[48].mxu0  ;;  %1615 = vmatmul.mubr.msk.bf16.vlgmr.msra.gmra.mrb[44].mxu1 %vm315_vm1, %v2044_v52 }
 0x185   : > { %v1536_v46 = vpop.f32.mrb[49].mxu0  ;;  %1620 = vmatprep.mubr.msk.bf16.mxu1 %vm1806_vm0, %v1805_v0 }
 0x186   : > { %v494_v47 = vpop.f32.mrb[50].mxu0 }
 0x187   : > { %v526_v48 = vpack.c.bf16 %v494_v47, %v491_v45  ;;  %v1537_v49 = vpop.f32.mrb[51].mxu0 }
 0x189   : > { %1619 = vmatpush3.bf16.msra.mxu1 %v526_v48 }
 0x18a   : > { %1624 = vmatprep.subr.bf16.mxu1 %v1805_v0 }
 0x18c   : > { %v499_v50 = vpop.f32.mrb[52].mxu0  ;;  %1621 = vmatmul.mubr.msk.bf16.vlgmr.msra.gmra.mrb[48].mxu1 %vm315_vm1, %v2044_v52 }
 0x18d   : > { %v1540_v51 = vpop.f32.mrb[53].mxu0  ;;  %1626 = vmatprep.mubr.msk.bf16.mxu1 %vm1806_vm0, %v1805_v0 }
 0x18e   : > { %v502_v53 = vpop.f32.mrb[54].mxu0 }
 0x18f   : > { %v527_v54 = vpack.c.bf16 %v502_v53, %v499_v50  ;;  %v1541_v55 = vpop.f32.mrb[55].mxu0 }
 0x191   : > { %1625 = vmatpush3.bf16.msra.mxu1 %v527_v54 }
 0x192   : > { %1630 = vmatprep.subr.bf16.mxu1 %v1805_v0 }
 0x194   : > { %v507_v56 = vpop.f32.mrb[56].mxu0  ;;  %1627 = vmatmul.mubr.msk.bf16.vlgmr.msra.gmra.mrb[52].mxu1 %vm315_vm1, %v2044_v52 }
 0x195   : > { %v1544_v57 = vpop.f32.mrb[57].mxu0  ;;  %1632 = vmatprep.mubr.msk.bf16.mxu1 %vm1806_vm0, %v1805_v0 }
 0x196   : > { %v510_v58 = vpop.f32.mrb[58].mxu0 }
 0x197   : > { %v528_v59 = vpack.c.bf16 %v510_v58, %v507_v56  ;;  %v1545_v60 = vpop.f32.mrb[59].mxu0 }
 0x199   : > { %1631 = vmatpush3.bf16.msra.mxu1 %v528_v59 }
 0x19c   : > { %1633 = vmatmul.mubr.msk.bf16.vlgmr.msra.gmra.mrb[56].mxu1 %vm315_vm1, %v2044_v52 }
 0x1ff   : > { %v573_v61 = vpop.f32.mrb[0].mxu1 }
 0x200   : > { %v1550_v62 = vpop.f32.mrb[1].mxu1  ;;  %v1154_v10 = vmul.f32 %v573_v61, %v573_v61 }
 0x201   : > { %v576_v63 = vpop.f32.mrb[2].mxu1 }
 0x202   : > { %v1551_v1 = vpop.f32.mrb[3].mxu1  ;;  %v1155_v52 = vmul.f32 %v576_v63, %v576_v63 }
 0x207   : > { %v614_v2 = vpop.f32.mrb[4].mxu1 }
 0x208   : > { %v1556_v3 = vpop.f32.mrb[5].mxu1  ;;  %v1156_v21 = vmul.f32 %v614_v2, %v614_v2 }
 0x209   : > { %v617_v4 = vpop.f32.mrb[6].mxu1 }
 0x20a   : > { %v1557_v5 = vpop.f32.mrb[7].mxu1  ;;  %v1157_v26 = vmul.f32 %v617_v4, %v617_v4 }
 0x20f   : > { %v655_v6 = vpop.f32.mrb[8].mxu1 }
 0x210   : > { %v1562_v7 = vpop.f32.mrb[9].mxu1  ;;  %v1158_v33 = vmul.f32 %v655_v6, %v655_v6 }
 0x211   : > { %v658_v8 = vpop.f32.mrb[10].mxu1 }
 0x212   : > { %v1563_v9 = vpop.f32.mrb[11].mxu1  ;;  %v1159_v38 = vmul.f32 %v658_v8, %v658_v8 }
 0x217   : > { %v696_v0 = vpop.f32.mrb[12].mxu1 }
 0x218   : > { %v1160_v11 = vmul.f32 %v696_v0, %v696_v0  ;;  %v2118_v12 = vmul.f32 %v696_v0, %v573_v61  ;;  %v1568_v13 = vpop.f32.mrb[13].mxu1 }
 0x219   : > { %v699_v14 = vpop.f32.mrb[14].mxu1 }
 0x21a   : > { %v1220_v15 = vadd.f32 %v1160_v11, %v1154_v10  ;;  %v1161_v16 = vmul.f32 %v699_v14, %v699_v14  ;;  %v2120_v17 = vmul.f32 %v699_v14, %v576_v63  ;;  %v1569_v18 = vpop.f32.mrb[15].mxu1 }
 0x21c   : > { %v1221_v19 = vadd.f32 %v1161_v16, %v1155_v52  ;;  %v1226_v7 = vadd.f32 0.0001, %v1220_v15 }
 0x21e   : > { %v1227_v0 = vadd.f32 0.0001, %v1221_v19 }
 0x21f   : > { %v737_v20 = vpop.f32.mrb[16].mxu1 }
 0x220   : > { %v1162_v22 = vmul.f32 %v737_v20, %v737_v20  ;;  %v2122_v23 = vmul.f32 %v737_v20, %v614_v2  ;;  %v1574_v24 = vpop.f32.mrb[17].mxu1 }
 0x221   : > { %v740_v25 = vpop.f32.mrb[18].mxu1 }
 0x222   : > { %v1222_v27 = vadd.f32 %v1162_v22, %v1156_v21  ;;  %v1163_v28 = vmul.f32 %v740_v25, %v740_v25  ;;  %v2124_v29 = vmul.f32 %v740_v25, %v617_v4  ;;  %v1575_v30 = vpop.f32.mrb[19].mxu1 }
 0x224   : > { %v1223_v31 = vadd.f32 %v1163_v28, %v1157_v26 }
 0x227   : > { %v778_v32 = vpop.f32.mrb[20].mxu1 }
 0x228   : > { %v1164_v34 = vmul.f32 %v778_v32, %v778_v32  ;;  %v2126_v35 = vmul.f32 %v778_v32, %v655_v6  ;;  %v1580_v36 = vpop.f32.mrb[21].mxu1 }
 0x229   : > { %v781_v37 = vpop.f32.mrb[22].mxu1 }
 0x22a   : > { %v1224_v39 = vadd.f32 %v1164_v34, %v1158_v33  ;;  %v1165_v40 = vmul.f32 %v781_v37, %v781_v37  ;;  %v2128_v41 = vmul.f32 %v781_v37, %v658_v8  ;;  %v1581_v42 = vpop.f32.mrb[23].mxu1 }
 0x22c   : > { %v1225_v43 = vadd.f32 %v1165_v40, %v1159_v38 }
 0x22f   : > { %v819_v44 = vpop.f32.mrb[24].mxu1 }
 0x230   : > { %v1172_v45 = vsub.f32 %v819_v44, %v1154_v10  ;;  %v1586_v46 = vpop.f32.mrb[25].mxu1 }
 0x231   : > { %v822_v47 = vpop.f32.mrb[26].mxu1 }
 0x232   : > { %v1173_v48 = vsub.f32 %v822_v47, %v1155_v52  ;;  %v1587_v49 = vpop.f32.mrb[27].mxu1 }
 0x237   : > { %v860_v50 = vpop.f32.mrb[28].mxu1 }
 0x238   : > { %v1174_v51 = vsub.f32 %v860_v50, %v1156_v21  ;;  %v1592_v53 = vpop.f32.mrb[29].mxu1 }
 0x239   : > { %v863_v54 = vpop.f32.mrb[30].mxu1 }
 0x23a   : > { %v1175_v55 = vsub.f32 %v863_v54, %v1157_v26  ;;  %v1593_v56 = vpop.f32.mrb[31].mxu1 }
 0x23f   : > { %v901_v57 = vpop.f32.mrb[32].mxu1 }
 0x240   : > { %v1176_v58 = vsub.f32 %v901_v57, %v1158_v33  ;;  %v1598_v59 = vpop.f32.mrb[33].mxu1  ;;  %v1229_v33 = vadd.f32 0.0001, %v1223_v31  ;;  %v1190_v31 = vmul.f32 2.0, %v2118_v12 }
 0x241   : > { %v904_v60 = vpop.f32.mrb[34].mxu1 }
 0x242   : > { %v1177_v61 = vsub.f32 %v904_v60, %v1159_v38  ;;  %v1599_v62 = vpop.f32.mrb[35].mxu1  ;;  %v1196_v57 = vadd.f32 0.0001, %v1190_v31 }
 0x247   : > { %v942_v63 = vpop.f32.mrb[36].mxu1 }
 0x248   : > { %v1178_v1 = vsub.f32 %v942_v63, %v1160_v11  ;;  %v1604_v2 = vpop.f32.mrb[37].mxu1  ;;  %v1228_v11 = vadd.f32 0.0001, %v1222_v27 }
 0x249   : > { %v945_v3 = vpop.f32.mrb[38].mxu1 }
 0x24a   : > { %v1232_v4 = vadd.f32 %v1178_v1, %v1172_v45  ;;  %v1179_v5 = vsub.f32 %v945_v3, %v1161_v16  ;;  %v1605_v6 = vpop.f32.mrb[39].mxu1 }
 0x24c   : > { %v1238_v8 = vadd.f32 0.0009, %v1232_v4  ;;  %v1233_v9 = vadd.f32 %v1179_v5, %v1173_v48 }
 0x24e   : > { %v1244_v10 = vmul.f32 %v1238_v8, %v1226_v7  ;;  %v1239_v13 = vadd.f32 0.0009, %v1233_v9 }
 0x24f   : > { %v983_v14 = vpop.f32.mrb[40].mxu1 }
 0x250   : > { %v1245_v52 = vmul.f32 %v1239_v13, %v1227_v0  ;;  %v1180_v18 = vsub.f32 %v983_v14, %v1162_v22  ;;  %v1610_v20 = vpop.f32.mrb[41].mxu1  ;;  %v1230_v22 = vadd.f32 0.0001, %v1224_v39  ;;  %1689 = vrcp.f32 %v1244_v10 }
 0x251   : > { %v986_v21 = vpop.f32.mrb[42].mxu1 }
 0x252   : > { %v1234_v24 = vadd.f32 %v1180_v18, %v1174_v51  ;;  %v1181_v25 = vsub.f32 %v986_v21, %v1163_v28  ;;  %v1611_v26 = vpop.f32.mrb[43].mxu1  ;;  %v1231_v28 = vadd.f32 0.0001, %v1225_v43  ;;  %1691 = vrcp.f32 %v1245_v52 }
 0x254   : > { %v1240_v30 = vadd.f32 0.0009, %v1234_v24  ;;  %v1235_v32 = vadd.f32 %v1181_v25, %v1175_v55  ;;  %v1191_v55 = vmul.f32 2.0, %v2120_v17 }
 0x256   : > { %v1246_v16 = vmul.f32 %v1240_v30, %v1228_v11  ;;  %v1241_v36 = vadd.f32 0.0009, %v1235_v32  ;;  %v1197_v59 = vadd.f32 0.0001, %v1191_v55 }
 0x257   : > { %v1024_v15 = vpop.f32.mrb[44].mxu1 }
 0x258   : > { %v1247_v37 = vmul.f32 %v1241_v36, %v1229_v33  ;;  %v1182_v38 = vsub.f32 %v1024_v15, %v1164_v34  ;;  %v1616_v19 = vpop.f32.mrb[45].mxu1  ;;  %1693 = vrcp.f32 %v1246_v16  ;;  %v1195_v16 = vmul.f32 2.0, %v2128_v41 }
 0x259   : > { %v1027_v42 = vpop.f32.mrb[46].mxu1 }
 0x25a   : > { %v1236_v44 = vadd.f32 %v1182_v38, %v1176_v58  ;;  %v1183_v45 = vsub.f32 %v1027_v42, %v1165_v40  ;;  %v1617_v46 = vpop.f32.mrb[47].mxu1  ;;  %v1690_v62 = vpop.eup %1689  ;;  %1695 = vrcp.f32 %v1247_v37 }
 0x25c   : > { %v1242_v47 = vadd.f32 0.0009, %v1236_v44  ;;  %v1237_v48 = vadd.f32 %v1183_v45, %v1177_v61  ;;  %v1692_v5 = vpop.eup %1691 }
 0x25e   : > { %v1248_v49 = vmul.f32 %v1242_v47, %v1230_v22  ;;  %v1243_v27 = vadd.f32 0.0009, %v1237_v48  ;;  %v1201_v22 = vadd.f32 0.0001, %v1195_v16 }
 0x25f   : > { %v1065_v50 = vpop.f32.mrb[48].mxu1 }
 0x260   : > { %v1249_v51 = vmul.f32 %v1243_v27, %v1231_v28  ;;  %v1184_v53 = vsub.f32 %v1065_v50, %v2118_v12  ;;  %v1622_v34 = vpop.f32.mrb[49].mxu1  ;;  %v1192_v12 = vmul.f32 2.0, %v2122_v23  ;;  %1697 = vrcp.f32 %v1248_v49 }
 0x261   : > { %v1068_v54 = vpop.f32.mrb[50].mxu1 }
 0x262   : > { %v1202_v40 = vmul.f32 2.0, %v1184_v53  ;;  %v1185_v39 = vsub.f32 %v1068_v54, %v2120_v17  ;;  %v1623_v56 = vpop.f32.mrb[51].mxu1  ;;  %v1193_v17 = vmul.f32 2.0, %v2124_v29  ;;  %v1198_v13 = vadd.f32 0.0001, %v1192_v12  ;;  %v1694_v24 = vpop.eup %1693 }
 0x263   : > { %1699 = vrcp.f32 %v1249_v51 }
 0x264   : > { %v1208_v58 = vadd.f32 0.0009, %v1202_v40  ;;  %v1203_v43 = vmul.f32 2.0, %v1185_v39  ;;  %v1199_v18 = vadd.f32 0.0001, %v1193_v17  ;;  %v1696_v33 = vpop.eup %1695 }
 0x266   : > { %v1214_v60 = vmul.f32 %v1208_v58, %v1196_v57  ;;  %v1209_v61 = vadd.f32 0.0009, %v1203_v43 }
 0x267   : > { %v1106_v63 = vpop.f32.mrb[52].mxu1 }
 0x268   : > { %v1215_v1 = vmul.f32 %v1209_v61, %v1197_v59  ;;  %v1186_v2 = vsub.f32 %v1106_v63, %v2122_v23  ;;  %v1628_v3 = vpop.f32.mrb[53].mxu1  ;;  %v1256_v4 = vmul.f32 %v1690_v62, %v1214_v60 }
 0x269   : > { %v1109_v6 = vpop.f32.mrb[54].mxu1 }
 0x26a   : > { %v1204_v7 = vmul.f32 2.0, %v1186_v2  ;;  %v1187_v8 = vsub.f32 %v1109_v6, %v2124_v29  ;;  %v1262_v9 = vsel %vm315_vm1, %v1256_v4, 0.0  ;;  %v1629_v0 = vpop.f32.mrb[55].mxu1  ;;  %v1257_v10 = vmul.f32 %v1692_v5, %v1215_v1  ;;  %v1698_v28 = vpop.eup %1697 }
 0x26b   : > { %1263 = vadd.xlane.f32.xlu0 %v1262_v9  ;;  %v1194_v29 = vmul.f32 2.0, %v2126_v35 }
 0x26c   : > { %v1210_v14 = vadd.f32 0.0009, %v1204_v7  ;;  %v1205_v52 = vmul.f32 2.0, %v1187_v8  ;;  %v1265_v21 = vsel %vm315_vm1, %v1257_v10, 0.0 }
 0x26d   : > { %v1200_v44 = vadd.f32 0.0001, %v1194_v29  ;;  %v1700_v50 = vpop.eup %1699 }
 0x26e   : > { %v1216_v23 = vmul.f32 %v1210_v14, %v1198_v13  ;;  %v1211_v20 = vadd.f32 0.0009, %v1205_v52 }
 0x26f   : > { %1266 = vadd.xlane.f32.xlu0 %v1265_v21  ;;  %v1147_v25 = vpop.f32.mrb[56].mxu1 }
 0x270   : > { %v1217_v26 = vmul.f32 %v1211_v20, %v1199_v18  ;;  %v1188_v11 = vsub.f32 %v1147_v25, %v2126_v35  ;;  %v1634_v30 = vpop.f32.mrb[57].mxu1  ;;  %v1258_v32 = vmul.f32 %v1694_v24, %v1216_v23 }
 0x271   : > { %v1150_v36 = vpop.f32.mrb[58].mxu1 }
 0x272   : > { %v1206_v15 = vmul.f32 2.0, %v1188_v11  ;;  %v1189_v37 = vsub.f32 %v1150_v36, %v2128_v41  ;;  %v1268_v38 = vsel %vm315_vm1, %v1258_v32, 0.0  ;;  %v1635_v19 = vpop.f32.mrb[59].mxu1  ;;  %v1259_v42 = vmul.f32 %v1696_v33, %v1217_v26 }
 0x273   : > { %1269 = vadd.xlane.f32.xlu1 %v1268_v38 }
 0x274   : > { %v1212_v45 = vadd.f32 0.0009, %v1206_v15  ;;  %v1207_v46 = vmul.f32 2.0, %v1189_v37  ;;  %v1271_v48 = vsel %vm315_vm1, %v1259_v42, 0.0 }
 0x276   : > { %v1218_v35 = vmul.f32 %v1212_v45, %v1200_v44  ;;  %v1213_v47 = vadd.f32 0.0009, %v1207_v46 }
 0x277   : > { %1272 = vadd.xlane.f32.xlu1 %v1271_v48 }
 0x278   : > { %v1219_v49 = vmul.f32 %v1213_v47, %v1201_v22  ;;  %v1260_v27 = vmul.f32 %v1698_v28, %v1218_v35 }
 0x27a   : > { %v1274_v41 = vsel %vm315_vm1, %v1260_v27, 0.0  ;;  %v1261_v31 = vmul.f32 %v1700_v50, %v1219_v49 }
 0x27b   : > { %1275 = vadd.xlane.f32.xlu0 %v1274_v41 }
 0x27c   : > { %v1277_v51 = vsel %vm315_vm1, %v1261_v31, 0.0 }
 0x27d   : > { %1278 = vadd.xlane.f32.xlu1 %v1277_v51 }
 0x2f8   : > { %v1264_v53 = vpop.xlane.xlu0 %1263 }
 0x2fc   : > { %v1267_v34 = vpop.xlane.xlu0 %1266 }
 0x2fd   : > { %v1280_v54 = vadd.f32 %v1267_v34, %v1264_v53 }
 0x2ff   : > { %v1281_v55 = vrot.slane %v1280_v54, 4 }
 0x300   : > { %v1270_v40 = vpop.xlane.xlu1 %1269 }
 0x301   : > { %v1282_v39 = vadd.f32 %v1281_v55, %v1280_v54 }
 0x303   : > { %v1283_v56 = vrot.slane %v1282_v39, 2 }
 0x304   : > { %v1273_v57 = vpop.xlane.xlu1 %1272 }
 0x305   : > { %v1284_v58 = vadd.f32 %v1283_v56, %v1282_v39  ;;  %v1287_v43 = vadd.f32 %v1273_v57, %v1270_v40 }
 0x307   : > { %v1285_v59 = vrot.slane %v1284_v58, 1  ;;  %v1288_v60 = vrot.slane %v1287_v43, 4 }
 0x308   : > { %v1276_v63 = vpop.xlane.xlu0 %1275 }
 0x309   : > { %v1286_v61 = vadd.f32 %v1285_v59, %v1284_v58  ;;  %v1289_v62 = vadd.f32 %v1288_v60, %v1287_v43 }
 0x30a   : > { %v1279_v12 = vpop.xlane.xlu1 %1278 }
 0x30b   : > { %1302 = vst.msk [vmem:[%s259_s15] sm:$0x1] %vm1301_vm2, %v1286_v61  ;;  %v1290_v1 = vrot.slane %v1289_v62, 2  ;;  %v1294_v2 = vadd.f32 %v1279_v12, %v1276_v63 }
 0x30d   : > { %v1291_v3 = vadd.f32 %v1290_v1, %v1289_v62  ;;  %v1295_v4 = vrot.slane %v1294_v2, 4 }
 0x30f   : > { %v1292_v5 = vrot.slane %v1291_v3, 1  ;;  %v1296_v17 = vadd.f32 %v1295_v4, %v1294_v2 }
 0x311   : > { %v1293_v6 = vadd.f32 %v1292_v5, %v1291_v3  ;;  %v1297_v7 = vrot.slane %v1296_v17, 2 }
 0x313   : > { %1303 = vst.msk [vmem:[%s259_s15 + $0x1] sm:$0x1] %vm1301_vm2, %v1293_v6  ;;  %v1298_v8 = vadd.f32 %v1297_v7, %v1296_v17 }
 0x315   : > { %v1299_v9 = vrot.slane %v1298_v8, 1 }
 0x317   : > { %v1300_v0 = vadd.f32 %v1299_v9, %v1298_v8 }
 0x319   : > { %1304 = vst.msk [vmem:[%s259_s15 + $0x2] sm:$0x1] %vm1301_vm2, %v1300_v0 }
 0x31a PF: > { %p17_p11 = scmp.ge.s32.totalorder %s1852_s20, 4   ;;  %s2180_s15 = smov %s1791_s16 }
 0x31b   : > { %s2181_s16 = smov %s1795_s17  ;;  %s2182_s17 = smov %s1862_s23 }
 0x31c   : > { %s2183_s18 = smov %s1852_s20  ;;  %19 = sbr.rel (!%p17_p11) target bundleno = 5 (0x5), region = 89 }
 0x323   :  { %1325 = vsyncpa [#allocation3], 1 }
 0x324   :  { %1327 = vsyncpa [#allocation3 + $0x1], 1 }
 0x325   :  { %1328 = vsyncpa [#allocation5], 1 }
 0x326   :  { %1330 = vsyncpa [#allocation5 + $0x1], 1 }

</bundles_post_ra>
